<compile_context>
chip_gen: v7x
topology: tpu7x:2x2x1
jax: 0.10.0
libtpu: 0.0.40
codegen_flags: <defaults>
</compile_context>

<pallas_src>
import functools

import numpy as np
import jax
import jax.numpy as jnp
from jax.experimental import pallas as pl
from jax.experimental.pallas import tpu as pltpu


# ----------------------------------------------------------------------------
# Host-side (cached) shifted-DFT factor construction.
# ----------------------------------------------------------------------------
@functools.lru_cache(maxsize=None)
def _shifted_dft_factors_np(H, W):
    """Real/imag parts of A = roll(DFT_H, H//2, rows), B = roll(DFT_W, W//2, cols),
    such that Re(fftshift_HW(fft2(X))) = Ar X Br - Ai X Bi for real X."""
    kh, kw = np.arange(H), np.arange(W)
    dft_h = np.exp(-2j * np.pi * np.outer(kh, kh) / H)   # (H, H), symmetric
    dft_w = np.exp(-2j * np.pi * np.outer(kw, kw) / W)   # (W, W), symmetric
    A = np.roll(dft_h, H // 2, axis=0)                   # fftshift over H baked into rows
    B = np.roll(dft_w, W // 2, axis=1)                   # fftshift over W baked into cols
    return (np.ascontiguousarray(A.real.astype(np.float32)),
            np.ascontiguousarray(A.imag.astype(np.float32)),
            np.ascontiguousarray(B.real.astype(np.float32)),
            np.ascontiguousarray(B.imag.astype(np.float32)))


@functools.lru_cache(maxsize=None)
def _shifted_fft2_real_matrix_np(H, W):
    """(H*W, H*W) M with vec_row(Re(fftshift_HW(fft2(X)))) = vec_row(X) @ M."""
    ar, ai, br, bi = _shifted_dft_factors_np(H, W)
    A = ar + 1j * ai
    B = br + 1j * bi
    # Y = A X B  (X real, (H, W))  =>  vec_row(Y) = vec_row(X) @ (A^T kron B); take Re.
    return np.real(np.kron(A.T, B)).astype(np.float32)


# ----------------------------------------------------------------------------
# Generation-aware path selection.
# ----------------------------------------------------------------------------
def _vmem_capacity_bytes():
    try:
        return int(pltpu.get_tpu_info().vmem_capacity_bytes)
    except Exception:
        return 64 * 1024 * 1024   # v7x per-TensorCore VMEM (most restrictive gen)


def _use_kron_path(N, C, H, W, feat):
    """Dense Kron-M single-step kernel only while it is both VMEM-safe and not
    MXU-wasteful.  M is (H*W)^2 * 2 B in bf16: 4 MiB at H=W~38, 32 MiB at H=W=64
    (already past v7x's 64 MiB physical / 32 MiB scoped VMEM once double-buffered)."""
    hw = H * W
    m_bytes = hw * hw * 2                      # bf16 M
    x_bytes = N * C * hw * 2                   # bf16 x_flat
    w_bytes = (N * feat) * (N * C) * 2         # bf16 w_big
    y_bytes = N * C * hw * 4                   # f32 intermediate
    o_bytes = (N * feat) * hw * 4              # f32 output tile
    total = m_bytes + x_bytes + w_bytes + y_bytes + o_bytes
    budget = _vmem_capacity_bytes() // 2       # headroom for compiler scratch
    return (m_bytes <= 4 * 1024 * 1024) and (total <= budget)


# ----------------------------------------------------------------------------
# Path 1 (small H*W): single-step fully fused Kron-M kernel.
# ----------------------------------------------------------------------------
def _filter_trans_kron_kernel(x_ref, m_ref, w_ref, b_ref, o_ref):
    # x: (N*C, HW) bf16   m: (HW, HW) bf16   w: (N*feat, N*C) bf16   b: (N*feat, 1) f32
    # One K=HW matmul gives the shifted real 2-D DFT of every (batch, channel) row.
    y = jnp.dot(x_ref[...], m_ref[...], preferred_element_type=jnp.float32)
    # Channel mix + batch/channel fftshift (folded into w) + bias, lane-dense store.
    # NOTE: keeping the row-thin (N*C rows) operand on the K=HW matmul minimizes
    # MAC count; if feat/N grow, re-measure the (w @ x) @ m ordering (MXU
    # fill/drain vs MAC-count trade).
    out = jnp.dot(w_ref[...], y.astype(jnp.bfloat16),
                  preferred_element_type=jnp.float32) + b_ref[...]
    o_ref[...] = out.astype(o_ref.dtype)


def _filter_trans_kron(x, weight, bias):
    N, C, H, W = x.shape
    feat = weight.shape[0]
    HW = H * W

    # bf16 M: native MXU input dtype, halves HBM/VMEM for the dominant operand.
    m = jnp.asarray(_shifted_fft2_real_matrix_np(H, W), dtype=jnp.bfloat16)

    # Fold channel-fftshift into the conv-weight columns and batch-fftshift into a
    # block permutation -> one (N*feat, N*C) weight, zero data movement over x.
    w_eff = jnp.roll(weight, -(C // 2), axis=1)          # w_eff[f, c] = weight[f, (c+C//2)%C]
    perm = (np.arange(N) - (N // 2)) % N                 # output batch n reads input batch perm[n]
    P = np.zeros((N, N), np.float32)
    P[np.arange(N), perm] = 1.0
    w_big = jnp.kron(jnp.asarray(P), w_eff).astype(jnp.bfloat16)     # (N*feat, N*C)
    b_big = jnp.tile(bias.reshape(feat, 1), (N, 1)).astype(jnp.float32)

    x_flat = x.reshape(N * C, HW).astype(jnp.bfloat16)   # free row-major reshape

    out_flat = pl.pallas_call(
        _filter_trans_kron_kernel,
        out_shape=jax.ShapeDtypeStruct((N * feat, HW), jnp.float32),
        # No grid / full-array BlockSpecs: all operands (<400 KiB in bf16 at the
        # test size, gated to << VMEM by _use_kron_path) live in VMEM for one
        # step -> no per-step pipeline overhead, lane-dense unmasked stores.
        # The gate also keeps this under v5e's 16 MiB default scoped-VMEM limit,
        # so no vmem_limit_bytes override is needed on this path.
    )(x_flat, m, w_big, b_big)

    return out_flat.reshape(N, feat, H, W)


# ----------------------------------------------------------------------------
# Path 2 (larger H*W): two-stage Re(A X B) kernel, grid over all N*C images.
# ----------------------------------------------------------------------------
def _shifted_fft2_real_kernel(x_ref, ar_ref, ai_ref, br_ref, bi_ref, o_ref):
    x = x_ref[0, 0]                                                   # (H, W) bf16
    t_r = jnp.dot(ar_ref[...], x, preferred_element_type=jnp.float32)  # (H, W)
    t_i = jnp.dot(ai_ref[...], x, preferred_element_type=jnp.float32)
    y = (jnp.dot(t_r.astype(jnp.bfloat16), br_ref[...], preferred_element_type=jnp.float32)
         - jnp.dot(t_i.astype(jnp.bfloat16), bi_ref[...], preferred_element_type=jnp.float32))
    o_ref[0, 0] = y.astype(o_ref.dtype)


def _filter_trans_twostage(x, weight, bias):
    # Per-image shifted real 2-D DFT via 4 small matmuls (A/B are HxH / WxW, so
    # VMEM stays tiny even on v7x).  The batch- and channel-fftshift are folded
    # into the OUTPUT BlockSpec index_map (pure block relabeling, zero cost), so
    # the wrapper applies the original 1x1-conv weight directly afterwards.
    N, C, H, W = x.shape
    ar, ai, br, bi = (jnp.asarray(a, jnp.bfloat16)
                      for a in _shifted_dft_factors_np(H, W))
    x_bf = x.astype(jnp.bfloat16)

    shifted_real = pl.pallas_call(
        _shifted_fft2_real_kernel,
        out_shape=jax.ShapeDtypeStruct((N, C, H, W), jnp.float32),
        grid=(N * C,),
        in_specs=[
            pl.BlockSpec((1, 1, H, W), lambda g: (g // C, g % C, 0, 0)),
            pl.BlockSpec((H, H), lambda g: (0, 0)),
            pl.BlockSpec((H, H), lambda g: (0, 0)),
            pl.BlockSpec((W, W), lambda g: (0, 0)),
            pl.BlockSpec((W, W), lambda g: (0, 0)),
        ],
        out_specs=pl.BlockSpec(
            (1, 1, H, W),
            lambda g: ((g // C + N // 2) % N, (g % C + C // 2) % C, 0, 0)),
        compiler_params=pltpu.CompilerParams(
            dimension_semantics=("parallel",)),   # both v7x TensorCores used
    )(x_bf, ar, ai, br, bi)

    # 1x1 conv channel mixing (+ bias); fused by XLA under the outer jit.
    # TODO(synk): for very large H*W, tile H/W and fuse this mix into the kernel
    # to avoid the extra HBM pass over the (N, C, H, W) intermediate.
    out = jnp.einsum('fc,nchw->nfhw', weight, shifted_real)
    return out + bias[None, :, None, None]


# ----------------------------------------------------------------------------
# Public forward (fully jitted so the weight prep fuses / constant-folds).
# ----------------------------------------------------------------------------
@functools.partial(jax.jit, static_argnames=("mode", "impl"))
def filter_trans_forward(x, weight, bias, mode="low", impl=None):
    """x: (N, C, H, W) f32; weight: (feat, C) f32 (1x1 conv); bias: (feat,) f32."""
    del mode  # 'low' and 'high' branches of the original module are identical
    N, C, H, W = x.shape
    feat = weight.shape[0]
    if impl is None:
        impl = "kron" if _use_kron_path(N, C, H, W, feat) else "twostage"
    if impl == "kron":
        return _filter_trans_kron(x, weight, bias)
    return _filter_trans_twostage(x, weight, bias)


if __name__ == "__main__":
    key = jax.random.PRNGKey(0)
    N, C, H, W, feat = 2, 4, 16, 16, 32
    kx, kw, kb = jax.random.split(key, 3)

    x = jax.random.normal(kx, (N, C, H, W), dtype=jnp.float32)
    weight = jax.random.normal(kw, (feat, C), dtype=jnp.float32) * 0.1   # Conv2d(C, feat, 1) weight
    bias = jax.random.normal(kb, (feat,), dtype=jnp.float32) * 0.1       # Conv2d bias

    # Pure-JAX reference (torch semantics: fftn over dims (2, 3), fftshift over ALL dims).
    f = jnp.fft.fftn(x, axes=(2, 3))
    real = jnp.real(jnp.fft.fftshift(f))
    ref = jnp.einsum('fc,nchw->nfhw', weight, real) + bias[None, :, None, None]

    # Primary path (auto-selects the fused Kron-M kernel at this size).
    out_kron = jax.block_until_ready(filter_trans_forward(x, weight, bias, mode='low'))
    # Also exercise the large-H*W two-stage fallback at the small shape.
    out_two = jax.block_until_ready(
        filter_trans_forward(x, weight, bias, mode='low', impl='twostage'))

    assert out_kron.shape == (N, feat, H, W)
    assert out_two.shape == (N, feat, H, W)
    err_kron = float(jnp.max(jnp.abs(out_kron - ref)))
    err_two = float(jnp.max(jnp.abs(out_two - ref)))
    # Tolerance sized for bf16 MXU inputs (f32 accumulation); spectrum magnitudes
    # reach ~50 at the DC bin, so bf16 rounding allows ~0.1-0.15 abs deviation there.
    assert jnp.allclose(out_kron, ref, rtol=1e-2, atol=2e-1), ("kron", err_kron)
    assert jnp.allclose(out_two, ref, rtol=1e-2, atol=2e-1), ("twostage", err_two)
    print("KERNEL_OK")
</pallas_src>

<mosaic_0001>
module attributes {stable_mosaic.version = 11 : i64} {
  func.func @_filter_trans_kron_kernel(%arg0: memref<8x256xbf16, #tpu.memory_space<vmem>>, %arg1: memref<256x256xbf16, #tpu.memory_space<vmem>>, %arg2: memref<64x8xbf16, #tpu.memory_space<vmem>>, %arg3: memref<64x1xf32, #tpu.memory_space<vmem>>, %arg4: memref<64x256xf32, #tpu.memory_space<vmem>>) attributes {dimension_semantics = [], scalar_prefetch = 0 : i64, scratch_operands = 0 : i64, tpu.core_type = #tpu.core_type<tc>} {
    %c0 = arith.constant 0 : index
    %c0_0 = arith.constant 0 : index
    %0 = vector.load %arg0[%c0, %c0_0] : memref<8x256xbf16, #tpu.memory_space<vmem>>, vector<8x256xbf16>
    %c0_1 = arith.constant 0 : index
    %c0_2 = arith.constant 0 : index
    %1 = vector.load %arg1[%c0_1, %c0_2] : memref<256x256xbf16, #tpu.memory_space<vmem>>, vector<256x256xbf16>
    %cst = arith.constant dense<0.000000e+00> : vector<8x256xf32>
    %2 = tpu.matmul %0, %1, %cst {dimension_numbers = #tpu.dot_dimension_numbers<[1], [0], [0], [1], [0, 0, 1, 1], [], []>} : vector<8x256xbf16>, vector<256x256xbf16>, vector<8x256xf32> -> vector<8x256xf32>
    %c0_3 = arith.constant 0 : index
    %c0_4 = arith.constant 0 : index
    %3 = vector.load %arg2[%c0_3, %c0_4] : memref<64x8xbf16, #tpu.memory_space<vmem>>, vector<64x8xbf16>
    %4 = arith.truncf %2 : vector<8x256xf32> to vector<8x256xbf16>
    %cst_5 = arith.constant dense<0.000000e+00> : vector<64x256xf32>
    %5 = tpu.matmul %3, %4, %cst_5 {dimension_numbers = #tpu.dot_dimension_numbers<[1], [0], [0], [1], [0, 0, 1, 1], [], []>} : vector<64x8xbf16>, vector<8x256xbf16>, vector<64x256xf32> -> vector<64x256xf32>
    %c0_6 = arith.constant 0 : index
    %c0_7 = arith.constant 0 : index
    %6 = vector.load %arg3[%c0_6, %c0_7] : memref<64x1xf32, #tpu.memory_space<vmem>>, vector<64x1xf32>
    %7 = vector.broadcast %6 : vector<64x1xf32> to vector<64x256xf32>
    %8 = arith.addf %5, %7 : vector<64x256xf32>
    %c0_8 = arith.constant 0 : index
    %c0_9 = arith.constant 0 : index
    %9 = vector.load %arg4[%c0_8, %c0_9] : memref<64x256xf32, #tpu.memory_space<vmem>>, vector<64x256xf32>
    tpu.vector_store %arg4[%c0_8, %c0_9], %8 {strides = array<i32>} : memref<64x256xf32, #tpu.memory_space<vmem>>, vector<64x256xf32>,
    return
  }
}

</mosaic_0001>

<bundles_post_ra>
// kernel: filter_trans_forward.1
= control target key start
LH: loop header
LB: loop body
LE: loop exit
PB: predicated region body
PF: predicated region fallthrough
CT: control target
= control target key end

     0   :  { %v550_v35 = vmov 0   ;;  %vm350_vm0 = vcmask 1043456   ;;  %vm337_vm1 = vcmask 64512   ;;  %s759_s1 = inlined_call_operand.vmem [shape: bf16[256,256], index: 1, kind: input, shape index: {}]   ;;  %s760_s0 = inlined_call_operand.vmem [shape: bf16[8,256], index: 0, kind: input, shape index: {}]   ;;  %s761_s2 = inlined_call_operand.vmem [shape: bf16[64,8], index: 2, kind: input, shape index: {}]   ;;  %s762_s3 = inlined_call_operand.vmem [shape: f32[64,1], index: 3, kind: input, shape index: {}]   ;;  %s763_s4 = inlined_call_operand.vmem [shape: f32[64,256], index: 4, kind: output, shape index: {}]  }
   0x1   :  { %v496_v0 = vld [vmem:[%s759_s1 + $0x4] ss:$8 sps:$4 sm:$0xff]   ;;  %v498_v1 = vld [vmem:[%s759_s1] ss:$8 sps:$4 sm:$0xff]   ;;  %v499_v2 = vld [vmem:[%s759_s1 + $0x14] ss:$8 sps:$4 sm:$0xff]   ;;  %389 = vmatprep.mubr.bf16.mxu1 %v550_v35  ;;  %494 = vset.pattern.permute.xlu0 %v550_v35 }
   0x2   :  { %218 = vmatprep.subr.bf16.mxu0 %v496_v0  ;;  %v501_v3 = vld [vmem:[%s759_s1 + $0x10] ss:$8 sps:$4 sm:$0xff]   ;;  %v502_v4 = vld [vmem:[%s759_s1 + $0x24] ss:$8 sps:$4 sm:$0xff]   ;;  %v504_v5 = vld [vmem:[%s759_s1 + $0x20] ss:$8 sps:$4 sm:$0xff]   ;;  %495 = vset.pattern.permute.xlu1 %v550_v35 }
   0x3   :  { %219 = vmatpush1.bf16.msra.mxu0 %v498_v1  ;;  %v505_v6 = vld [vmem:[%s759_s1 + $0x34] ss:$8 sps:$4 sm:$0xff]   ;;  %v507_v7 = vld [vmem:[%s759_s1 + $0x30] ss:$8 sps:$4 sm:$0xff]   ;;  %v508_v8 = vld [vmem:[%s759_s1 + $0x44] ss:$8 sps:$4 sm:$0xff]  }
   0x4   :  { %220 = vmatprep.subr.bf16.mxu0 %v499_v2  ;;  %v510_v9 = vld [vmem:[%s759_s1 + $0x40] ss:$8 sps:$4 sm:$0xff]   ;;  %v511_v10 = vld [vmem:[%s759_s1 + $0x54] ss:$8 sps:$4 sm:$0xff]   ;;  %v513_v11 = vld [vmem:[%s759_s1 + $0x50] ss:$8 sps:$4 sm:$0xff]  }
   0x5   :  { %v514_v12 = vld [vmem:[%s759_s1 + $0x64] ss:$8 sps:$4 sm:$0xff]   ;;  %v516_v15 = vld [vmem:[%s759_s1 + $0x60] ss:$8 sps:$4 sm:$0xff]   ;;  %v517_v16 = vld [vmem:[%s759_s1 + $0x74] ss:$8 sps:$4 sm:$0xff]  }
   0x6   :  { %v18_v13 = vld [vmem:[%s760_s0] sm:$0xff]  ;;  %v519_v17 = vld [vmem:[%s759_s1 + $0x70] ss:$8 sps:$4 sm:$0xff]   ;;  %v523_v20 = vld [vmem:[%s759_s1 + $0x94] ss:$8 sps:$4 sm:$0xff]  }
   0x7   :  { %221 = vmatpush1.bf16.msra.mxu0 %v501_v3  ;;  %v451_v14 = vcombine.high %v18_v13, %v18_v13  ;;  %v520_v18 = vld [vmem:[%s759_s1 + $0x84] ss:$8 sps:$4 sm:$0xff]   ;;  %v522_v19 = vld [vmem:[%s759_s1 + $0x80] ss:$8 sps:$4 sm:$0xff]   ;;  %v525_v21 = vld [vmem:[%s759_s1 + $0x90] ss:$8 sps:$4 sm:$0xff]   ;;  %v450_v34 = vcombine.low %v18_v13, %v18_v13 }
   0x8   :  { %222 = vmatprep.subr.bf16.mxu0 %v502_v4  ;;  %v526_v22 = vld [vmem:[%s759_s1 + $0xa4] ss:$8 sps:$4 sm:$0xff]   ;;  %v528_v23 = vld [vmem:[%s759_s1 + $0xa0] ss:$8 sps:$4 sm:$0xff]   ;;  %v529_v24 = vld [vmem:[%s759_s1 + $0xb4] ss:$8 sps:$4 sm:$0xff]  }
   0x9   :  { %250 = vmatprep.mubr.bf16.mxu0 %v451_v14  ;;  %v531_v25 = vld [vmem:[%s759_s1 + $0xb0] ss:$8 sps:$4 sm:$0xff]   ;;  %v532_v26 = vld [vmem:[%s759_s1 + $0xc4] ss:$8 sps:$4 sm:$0xff]   ;;  %v534_v27 = vld [vmem:[%s759_s1 + $0xc0] ss:$8 sps:$4 sm:$0xff]  }
   0xa   :  { %v535_v28 = vld [vmem:[%s759_s1 + $0xd4] ss:$8 sps:$4 sm:$0xff]   ;;  %v537_v29 = vld [vmem:[%s759_s1 + $0xd0] ss:$8 sps:$4 sm:$0xff]   ;;  %v538_v30 = vld [vmem:[%s759_s1 + $0xe4] ss:$8 sps:$4 sm:$0xff]  }
   0xb   :  { %223 = vmatpush1.bf16.msra.mxu0 %v504_v5  ;;  %v540_v31 = vld [vmem:[%s759_s1 + $0xe0] ss:$8 sps:$4 sm:$0xff]   ;;  %v541_v32 = vld [vmem:[%s759_s1 + $0xf4] ss:$8 sps:$4 sm:$0xff]   ;;  %v543_v33 = vld [vmem:[%s759_s1 + $0xf0] ss:$8 sps:$4 sm:$0xff]  }
   0xc   :  { %224 = vmatprep.subr.bf16.mxu0 %v505_v6  ;;  %v269_v36 = vld [vmem:[%s762_s3] sm:$0xff]  ;;  %v271_v37 = vld [vmem:[%s762_s3 + $0x10] sm:$0xff]  ;;  %v270_v38 = vld [vmem:[%s762_s3 + $0x8] sm:$0xff] }
   0xd   :  { %279 = vperm.xlu0 %494, %v269_v36   ;;  %289 = vperm.xlu1 %495, %v271_v37   ;;  %v272_v39 = vld [vmem:[%s762_s3 + $0x18] sm:$0xff]  ;;  %v274_v40 = vld [vmem:[%s762_s3 + $0x28] sm:$0xff]  ;;  %v273_v41 = vld [vmem:[%s762_s3 + $0x20] sm:$0xff] }
   0xe   :  { %v276_v42 = vld [vmem:[%s762_s3 + $0x38] sm:$0xff]  ;;  %v275_v43 = vld [vmem:[%s762_s3 + $0x30] sm:$0xff]  ;;  %v546_v51 = vld [vmem:[%s761_s2] sm:$0xff]  }
   0xf   :  { %225 = vmatpush1.bf16.msra.mxu0 %v507_v7  ;;  %v547_v52 = vld [vmem:[%s761_s2 + $0x8] sm:$0xff]   ;;  %v548_v53 = vld [vmem:[%s761_s2 + $0x10] sm:$0xff]   ;;  %v549_v54 = vld [vmem:[%s761_s2 + $0x18] sm:$0xff]  }
  0x10   :  { %226 = vmatprep.subr.bf16.mxu0 %v508_v8 }
  0x11   :  { %284 = vperm.xlu0 %494, %v270_v38   ;;  %294 = vperm.xlu1 %495, %v272_v39  }
  0x13   :  { %227 = vmatpush1.bf16.msra.mxu0 %v510_v9 }
  0x14   :  { %228 = vmatprep.subr.bf16.mxu0 %v511_v10 }
  0x15   :  { %304 = vperm.xlu1 %495, %v274_v40   ;;  %299 = vperm.xlu0 %494, %v273_v41  }
  0x17   :  { %229 = vmatpush1.bf16.msra.mxu0 %v513_v11 }
  0x18   :  { %230 = vmatprep.subr.bf16.mxu0 %v514_v12 }
  0x19   :  { %314 = vperm.xlu1 %495, %v276_v42   ;;  %309 = vperm.xlu0 %494, %v275_v43  }
  0x1b   :  { %231 = vmatpush1.bf16.msra.mxu0 %v516_v15 }
  0x1c   :  { %232 = vmatprep.subr.bf16.mxu0 %v517_v16 }
  0x1f   :  { %233 = vmatpush1.bf16.msra.mxu0 %v519_v17 }
  0x20   :  { %234 = vmatprep.subr.bf16.mxu0 %v520_v18 }
  0x23   :  { %235 = vmatpush1.bf16.msra.mxu0 %v522_v19 }
  0x24   :  { %236 = vmatprep.subr.bf16.mxu0 %v523_v20 }
  0x27   :  { %237 = vmatpush1.bf16.msra.mxu0 %v525_v21 }
  0x28   :  { %238 = vmatprep.subr.bf16.mxu0 %v526_v22 }
  0x2b   :  { %239 = vmatpush1.bf16.msra.mxu0 %v528_v23 }
  0x2c   :  { %240 = vmatprep.subr.bf16.mxu0 %v529_v24 }
  0x2f   :  { %241 = vmatpush1.bf16.msra.mxu0 %v531_v25 }
  0x30   :  { %242 = vmatprep.subr.bf16.mxu0 %v532_v26 }
  0x33   :  { %243 = vmatpush1.bf16.msra.mxu0 %v534_v27 }
  0x34   :  { %244 = vmatprep.subr.bf16.mxu0 %v535_v28 }
  0x37   :  { %245 = vmatpush1.bf16.msra.mxu0 %v537_v29 }
  0x38   :  { %246 = vmatprep.subr.bf16.mxu0 %v538_v30 }
  0x3b   :  { %247 = vmatpush1.bf16.msra.mxu0 %v540_v31 }
  0x3c   :  { %248 = vmatprep.subr.bf16.mxu0 %v541_v32 }
  0x3f   :  { %249 = vmatpush1.bf16.msra.mxu0 %v543_v33 }
  0x42   :  { %251 = vmatmul.mubr.bf16.vlgmr.msra.gmra.mrb[0].mxu0 %v450_v34 }
  0x8c   :  { %v280_v55 = vpop.permute.xlu0 %279  ;;  %v290_v0 = vpop.permute.xlu1 %289 }
  0x90   :  { %v285_v57 = vpop.permute.xlu0 %284  ;;  %v295_v5 = vpop.permute.xlu1 %294 }
  0x94   :  { %v300_v11 = vpop.permute.xlu0 %299  ;;  %v305_v15 = vpop.permute.xlu1 %304 }
  0x98   :  { %v310_v21 = vpop.permute.xlu0 %309  ;;  %v315_v25 = vpop.permute.xlu1 %314 }
 0x115   :  { %v252_v44 = vpop.f32.mrb[0].mxu0 }
 0x116   :  { %v267_v45 = vpack.c.bf16 %v252_v44, %v252_v44  ;;  %v254_v46 = vpop.f32.mrb[1].mxu0 }
 0x117   :  { %v268_v47 = vpack.c.bf16 %v254_v46, %v254_v46  ;;  %v256_v48 = vpop.f32.mrb[2].mxu0 }
 0x118   :  { %v257_v49 = vpop.f32.mrb[3].mxu0  ;;  %v352_v50 = vsel %vm350_vm0, %v267_v45, 0 }
 0x119   :  { %488 = vmatprep.subr.msk.bf16.mxu1 %vm350_vm0, %v268_v47 }
 0x11a   :  { %358 = vmatpush1.bf16.msra.mxu1 %v352_v50 }
 0x11d   :  { %489 = vmatmul.mubr.msk.bf16.vlgmr.msra.gmra.mrb[0].mxu1 %vm337_vm1, %v546_v51 }
 0x11e   :  { %399 = vmatprep.mubr.bf16.mxu1 %v550_v35 }
 0x125   :  { %490 = vmatmul.mubr.msk.bf16.gmra.mrb[4].mxu1 %vm337_vm1, %v547_v52 }
 0x126   :  { %409 = vmatprep.mubr.bf16.mxu1 %v550_v35 }
 0x12d   :  { %491 = vmatmul.mubr.msk.bf16.gmra.mrb[8].mxu1 %vm337_vm1, %v548_v53 }
 0x12e   :  { %419 = vmatprep.mubr.bf16.mxu1 %v550_v35 }
 0x135   :  { %492 = vmatmul.mubr.msk.bf16.gmra.mrb[12].mxu1 %vm337_vm1, %v549_v54 }
 0x1f0   :  { %v391_v56 = vpop.f32.mrb[0].mxu1 }
 0x1f1   :  { %v392_v58 = vadd.f32 %v391_v56, %v280_v55  ;;  %v393_v59 = vpop.f32.mrb[1].mxu1 }
 0x1f2   :  { %v394_v60 = vadd.f32 %v393_v59, %v280_v55  ;;  %v395_v61 = vpop.f32.mrb[2].mxu1 }
 0x1f3   :  { %430 = vst [vmem:[%s763_s4] sm:$0xff] %v392_v58  ;;  %v396_v62 = vadd.f32 %v395_v61, %v285_v57  ;;  %v397_v63 = vpop.f32.mrb[3].mxu1 }
 0x1f4   :  { %431 = vst [vmem:[%s763_s4 + $0x8] sm:$0xff] %v394_v60  ;;  %v398_v1 = vadd.f32 %v397_v63, %v285_v57 }
 0x1f5   :  { %432 = vst [vmem:[%s763_s4 + $0x10] sm:$0xff] %v396_v62 }
 0x1f6   :  { %433 = vst [vmem:[%s763_s4 + $0x18] sm:$0xff] %v398_v1 }
 0x1f8   :  { %v401_v2 = vpop.f32.mrb[4].mxu1 }
 0x1f9   :  { %v402_v3 = vadd.f32 %v401_v2, %v290_v0  ;;  %v403_v4 = vpop.f32.mrb[5].mxu1 }
 0x1fa   :  { %v404_v6 = vadd.f32 %v403_v4, %v290_v0  ;;  %v405_v7 = vpop.f32.mrb[6].mxu1 }
 0x1fb   :  { %434 = vst [vmem:[%s763_s4 + $0x20] sm:$0xff] %v402_v3  ;;  %v406_v8 = vadd.f32 %v405_v7, %v295_v5  ;;  %v407_v9 = vpop.f32.mrb[7].mxu1 }
 0x1fc   :  { %435 = vst [vmem:[%s763_s4 + $0x28] sm:$0xff] %v404_v6  ;;  %v408_v10 = vadd.f32 %v407_v9, %v295_v5 }
 0x1fd   :  { %436 = vst [vmem:[%s763_s4 + $0x30] sm:$0xff] %v406_v8 }
 0x1fe   :  { %437 = vst [vmem:[%s763_s4 + $0x38] sm:$0xff] %v408_v10 }
 0x200   :  { %v411_v12 = vpop.f32.mrb[8].mxu1 }
 0x201   :  { %v412_v13 = vadd.f32 %v411_v12, %v300_v11  ;;  %v413_v14 = vpop.f32.mrb[9].mxu1 }
 0x202   :  { %v414_v16 = vadd.f32 %v413_v14, %v300_v11  ;;  %v415_v17 = vpop.f32.mrb[10].mxu1 }
 0x203   :  { %438 = vst [vmem:[%s763_s4 + $0x40] sm:$0xff] %v412_v13  ;;  %v416_v18 = vadd.f32 %v415_v17, %v305_v15  ;;  %v417_v19 = vpop.f32.mrb[11].mxu1 }
 0x204   :  { %439 = vst [vmem:[%s763_s4 + $0x48] sm:$0xff] %v414_v16  ;;  %v418_v20 = vadd.f32 %v417_v19, %v305_v15 }
 0x205   :  { %440 = vst [vmem:[%s763_s4 + $0x50] sm:$0xff] %v416_v18 }
 0x206   :  { %441 = vst [vmem:[%s763_s4 + $0x58] sm:$0xff] %v418_v20 }
 0x208   :  { %v421_v22 = vpop.f32.mrb[12].mxu1 }
 0x209   :  { %v422_v23 = vadd.f32 %v421_v22, %v310_v21  ;;  %v423_v24 = vpop.f32.mrb[13].mxu1 }
 0x20a   :  { %v424_v26 = vadd.f32 %v423_v24, %v310_v21  ;;  %v425_v27 = vpop.f32.mrb[14].mxu1 }
 0x20b   :  { %442 = vst [vmem:[%s763_s4 + $0x60] sm:$0xff] %v422_v23  ;;  %v426_v28 = vadd.f32 %v425_v27, %v315_v25  ;;  %v427_v29 = vpop.f32.mrb[15].mxu1 }
 0x20c   :  { %443 = vst [vmem:[%s763_s4 + $0x68] sm:$0xff] %v424_v26  ;;  %v428_v30 = vadd.f32 %v427_v29, %v315_v25 }
 0x20d   :  { %444 = vst [vmem:[%s763_s4 + $0x70] sm:$0xff] %v426_v28 }
 0x20e   :  { %445 = vst [vmem:[%s763_s4 + $0x78] sm:$0xff] %v428_v30 }

</bundles_post_ra>
